<compile_context>
chip_gen: v6e
topology: v6e:2x2x1
jax: 0.10.0
libtpu: 0.0.40
codegen_flags: <defaults>
</compile_context>

<pallas_src>
import jax
import jax.numpy as jnp
from jax.experimental import pallas as pl
from jax.experimental.pallas import tpu as pltpu


def _round_up(n, m):
    return ((n + m - 1) // m) * m


def mlp_kernel(x_ref, w1_ref, b1_ref, w2_ref, b2_ref, o_ref):
    # Hidden layer: bf16 inputs into the MXU, f32 accumulate, f32 bias + ReLU on VPU.
    x = x_ref[...]
    if x.dtype != jnp.bfloat16:
        x = x.astype(jnp.bfloat16)   # no-op when the caller already supplies bf16
    h = jnp.dot(x, w1_ref[...], preferred_element_type=jnp.float32)
    h = jnp.maximum(h + b1_ref[...], 0.0)
    # Output layer (lane-dense, 128-wide padded head): bf16 matmul, f32 accumulate,
    # bf16 store (last dim is a multiple of 128 -> unmasked vst).
    out = jnp.dot(h.astype(jnp.bfloat16), w2_ref[...],
                  preferred_element_type=jnp.float32)
    o_ref[...] = (out + b2_ref[...]).astype(o_ref.dtype)


def mlp_classifier(x, w1, b1, w2, b2, *, batch_tile=512, return_padded=False):
    """x:[B,D] (bf16 preferred), w1:[D,H], b1:[1,H], w2:[H,C], b2:[1,C].

    Returns [B,C] logits (bf16) by default, or the padded [B_out, 128] bf16 slab
    when return_padded=True (cheapest form for downstream argmax/softmax).
    """
    B, D = x.shape
    H = w1.shape[1]
    C = w2.shape[1]

    # bf16 weights halve the W1 HBM traffic (dominant in the small-batch regime).
    w1_bf = w1.astype(jnp.bfloat16)
    # Lane-dense head: zero-pad the 2-class output dimension to a full 128 lanes.
    C_pad = max(128, _round_up(C, 128))
    w2_pad = jnp.zeros((H, C_pad), jnp.bfloat16).at[:, :C].set(w2.astype(jnp.bfloat16))
    b2_pad = jnp.zeros((1, C_pad), jnp.float32).at[:, :C].set(b2.astype(jnp.float32))
    b1_f = b1.reshape(1, H).astype(jnp.float32)

    if B <= 128:
        # Latency path: single grid step, pad only to a multiple of 16 rows
        # (bf16 sublane packing) -- a <16-row pad, not a full copy.
        TM = _round_up(max(B, 1), 16)
        x_in = x if TM == B else jnp.pad(x, ((0, TM - B), (0, 0)))
        B_out = TM
        grid = (1,)
    else:
        # Throughput path: big tiles to amortize per-step overhead, but always
        # >=2 steps so the "parallel" axis can shard across v7x's two TCs.
        TM = min(batch_tile, _round_up(-(-B // 2), 16))
        TM = max(TM, 16)
        x_in = x                      # ragged last tile; no full jnp.pad copy
        B_out = B
        grid = (pl.cdiv(B, TM),)

    out = pl.pallas_call(
        mlp_kernel,
        out_shape=jax.ShapeDtypeStruct((B_out, C_pad), jnp.bfloat16),
        grid=grid,
        in_specs=[
            pl.BlockSpec((TM, D), lambda i: (i, 0)),     # x: tiled over batch
            pl.BlockSpec((D, H), lambda i: (0, 0)),      # W1: constant block -> VMEM-resident
            pl.BlockSpec((1, H), lambda i: (0, 0)),      # b1: constant block
            pl.BlockSpec((H, C_pad), lambda i: (0, 0)),  # W2 (padded): constant block
            pl.BlockSpec((1, C_pad), lambda i: (0, 0)),  # b2 (padded): constant block
        ],
        out_specs=pl.BlockSpec((TM, C_pad), lambda i: (i, 0)),
        compiler_params=pltpu.CompilerParams(
            dimension_semantics=("parallel",)),
    )(x_in, w1_bf, b1_f, w2_pad, b2_pad)

    if return_padded:
        return out
    return out[:B, :C]


if __name__ == "__main__":
    input_dim, hidden_dim, num_classes = 768, 256, 2
    batch = 8

    key = jax.random.PRNGKey(0)
    kx, kw1, kb1, kw2, kb2 = jax.random.split(key, 5)

    # Producer emits bf16 activations directly (fused cast upstream, not a
    # standalone extra HBM pass in the wrapper).
    x = jax.random.normal(kx, (batch, input_dim), dtype=jnp.float32).astype(jnp.bfloat16)

    # Deterministic parameter init (shapes from the module's __init__),
    # mimicking PyTorch Linear's uniform(-1/sqrt(fan_in), 1/sqrt(fan_in)).
    lim1 = 1.0 / (input_dim ** 0.5)
    w1 = jax.random.uniform(kw1, (input_dim, hidden_dim),
                            minval=-lim1, maxval=lim1, dtype=jnp.float32)
    b1 = jax.random.uniform(kb1, (1, hidden_dim),
                            minval=-lim1, maxval=lim1, dtype=jnp.float32)
    lim2 = 1.0 / (hidden_dim ** 0.5)
    w2 = jax.random.uniform(kw2, (hidden_dim, num_classes),
                            minval=-lim2, maxval=lim2, dtype=jnp.float32)
    b2 = jax.random.uniform(kb2, (1, num_classes),
                            minval=-lim2, maxval=lim2, dtype=jnp.float32)

    out = mlp_classifier(x, w1, b1, w2, b2)
    jax.block_until_ready(out)
    assert out.shape == (batch, num_classes)
    out_f32 = out.astype(jnp.float32)

    # Reference using the same bf16-input / f32-accumulate math as the kernel.
    h_ref = jnp.maximum(
        jnp.dot(x, w1.astype(jnp.bfloat16),
                preferred_element_type=jnp.float32) + b1, 0.0)
    ref_bf16 = jnp.dot(h_ref.astype(jnp.bfloat16), w2.astype(jnp.bfloat16),
                       preferred_element_type=jnp.float32) + b2
    assert jnp.allclose(out_f32, ref_bf16, atol=2e-2, rtol=2e-2)

    # Sanity check against the full-f32 PyTorch-equivalent forward (looser tol due
    # to bf16 activation/weight quantization).
    x_f32 = x.astype(jnp.float32)
    ref_f32 = jnp.maximum(x_f32 @ w1 + b1, 0.0) @ w2 + b2
    assert jnp.allclose(out_f32, ref_f32, atol=5e-2, rtol=5e-2)

    print("KERNEL_OK")
</pallas_src>

<mosaic_0001>
module attributes {stable_mosaic.version = 11 : i64} {
  func.func @mlp_kernel(%arg0: i32, %arg1: memref<16x768xbf16, #tpu.memory_space<vmem>>, %arg2: memref<768x256xbf16, #tpu.memory_space<vmem>>, %arg3: memref<1x256xf32, #tpu.memory_space<vmem>>, %arg4: memref<256x128xbf16, #tpu.memory_space<vmem>>, %arg5: memref<1x128xf32, #tpu.memory_space<vmem>>, %arg6: memref<16x128xbf16, #tpu.memory_space<vmem>>) attributes {dimension_semantics = [#tpu.dimension_semantics<parallel>], iteration_bounds = array<i64: 1>, scalar_prefetch = 0 : i64, scratch_operands = 0 : i64, tpu.core_type = #tpu.core_type<tc>, window_params = [{transform_indices = @transform_0, window_bounds = array<i64: 16, 768>}, {pipeline_mode = #tpu.pipeline_mode<synchronous>, transform_indices = @transform_1, window_bounds = array<i64: 768, 256>}, {pipeline_mode = #tpu.pipeline_mode<synchronous>, transform_indices = @transform_2, window_bounds = array<i64: 1, 256>}, {pipeline_mode = #tpu.pipeline_mode<synchronous>, transform_indices = @transform_3, window_bounds = array<i64: 256, 128>}, {pipeline_mode = #tpu.pipeline_mode<synchronous>, transform_indices = @transform_4, window_bounds = array<i64: 1, 128>}, {transform_indices = @transform_5, window_bounds = array<i64: 16, 128>}]} {
    %c0 = arith.constant 0 : index
    %c0_0 = arith.constant 0 : index
    %0 = vector.load %arg1[%c0, %c0_0] : memref<16x768xbf16, #tpu.memory_space<vmem>>, vector<16x768xbf16>
    %c0_1 = arith.constant 0 : index
    %c0_2 = arith.constant 0 : index
    %1 = vector.load %arg2[%c0_1, %c0_2] : memref<768x256xbf16, #tpu.memory_space<vmem>>, vector<768x256xbf16>
    %cst = arith.constant dense<0.000000e+00> : vector<16x256xf32>
    %2 = tpu.matmul %0, %1, %cst {dimension_numbers = #tpu.dot_dimension_numbers<[1], [0], [0], [1], [0, 0, 1, 1], [], []>} : vector<16x768xbf16>, vector<768x256xbf16>, vector<16x256xf32> -> vector<16x256xf32>
    %c0_3 = arith.constant 0 : index
    %c0_4 = arith.constant 0 : index
    %3 = vector.load %arg3[%c0_3, %c0_4] : memref<1x256xf32, #tpu.memory_space<vmem>>, vector<1x256xf32>
    %4 = vector.broadcast %3 : vector<1x256xf32> to vector<16x256xf32>
    %5 = arith.addf %2, %4 : vector<16x256xf32>
    %cst_5 = arith.constant 0.000000e+00 : f32
    %6 = vector.broadcast %cst_5 : f32 to vector<16x256xf32>
    %7 = arith.maximumf %5, %6 : vector<16x256xf32>
    %8 = arith.truncf %7 : vector<16x256xf32> to vector<16x256xbf16>
    %c0_6 = arith.constant 0 : index
    %c0_7 = arith.constant 0 : index
    %9 = vector.load %arg4[%c0_6, %c0_7] : memref<256x128xbf16, #tpu.memory_space<vmem>>, vector<256x128xbf16>
    %cst_8 = arith.constant dense<0.000000e+00> : vector<16x128xf32>
    %10 = tpu.matmul %8, %9, %cst_8 {dimension_numbers = #tpu.dot_dimension_numbers<[1], [0], [0], [1], [0, 0, 1, 1], [], []>} : vector<16x256xbf16>, vector<256x128xbf16>, vector<16x128xf32> -> vector<16x128xf32>
    %c0_9 = arith.constant 0 : index
    %c0_10 = arith.constant 0 : index
    %11 = vector.load %arg5[%c0_9, %c0_10] : memref<1x128xf32, #tpu.memory_space<vmem>>, vector<1x128xf32>
    %12 = vector.broadcast %11 : vector<1x128xf32> to vector<16x128xf32>
    %13 = arith.addf %10, %12 : vector<16x128xf32>
    %14 = arith.truncf %13 : vector<16x128xf32> to vector<16x128xbf16>
    %c0_11 = arith.constant 0 : index
    %c0_12 = arith.constant 0 : index
    %15 = vector.load %arg6[%c0_11, %c0_12] : memref<16x128xbf16, #tpu.memory_space<vmem>>, vector<16x128xbf16>
    tpu.vector_store %arg6[%c0_11, %c0_12], %14 {strides = array<i32>} : memref<16x128xbf16, #tpu.memory_space<vmem>>, vector<16x128xbf16>,
    return
  }
  func.func @transform_0(%arg0: i32) -> (i32, i32) {
    %c0_i32 = arith.constant 0 : i32
    %c0_i32_0 = arith.constant 0 : i32
    return %arg0, %c0_i32 : i32, i32
  }
  func.func @transform_1(%arg0: i32) -> (i32, i32) {
    %c0_i32 = arith.constant 0 : i32
    %c0_i32_0 = arith.constant 0 : i32
    %c0_i32_1 = arith.constant 0 : i32
    return %c0_i32, %c0_i32_0 : i32, i32
  }
  func.func @transform_2(%arg0: i32) -> (i32, i32) {
    %c0_i32 = arith.constant 0 : i32
    %c0_i32_0 = arith.constant 0 : i32
    %c0_i32_1 = arith.constant 0 : i32
    return %c0_i32, %c0_i32_0 : i32, i32
  }
  func.func @transform_3(%arg0: i32) -> (i32, i32) {
    %c0_i32 = arith.constant 0 : i32
    %c0_i32_0 = arith.constant 0 : i32
    %c0_i32_1 = arith.constant 0 : i32
    return %c0_i32, %c0_i32_0 : i32, i32
  }
  func.func @transform_4(%arg0: i32) -> (i32, i32) {
    %c0_i32 = arith.constant 0 : i32
    %c0_i32_0 = arith.constant 0 : i32
    %c0_i32_1 = arith.constant 0 : i32
    return %c0_i32, %c0_i32_0 : i32, i32
  }
  func.func @transform_5(%arg0: i32) -> (i32, i32) {
    %c0_i32 = arith.constant 0 : i32
    %c0_i32_0 = arith.constant 0 : i32
    return %arg0, %c0_i32 : i32, i32
  }
}

</mosaic_0001>

<bundles_post_ra>
// kernel: tpu_custom_call.1
= control target key start
LH: loop header
LB: loop body
LE: loop exit
PB: predicated region body
PF: predicated region fallthrough
CT: control target
= control target key end

     0   :  { %10 = vsyncpa [#allocation3], 0  ;;  %s1505_s0 = inlined_call_operand.hbm [shape: bf16[16,768], index: 0, kind: input, shape index: {}]   ;;  %s1506_s1 = inlined_call_operand.hbm [shape: bf16[768,256], index: 1, kind: input, shape index: {}]   ;;  %s1507_s2 = inlined_call_operand.vmem [shape: f32[1,256], index: 2, kind: input, shape index: {}]   ;;  %s1508_s3 = inlined_call_operand.hbm [shape: bf16[256,128], index: 3, kind: input, shape index: {}]   ;;  %s1509_s4 = inlined_call_operand.vmem [shape: f32[1,128], index: 4, kind: input, shape index: {}]   ;;  %s1510_s5 = inlined_call_operand.hbm [shape: bf16[16,128], index: 5, kind: output, shape index: {}]  }
   0x1   :  { %11 = vsyncpa [#allocation6], 0 }
   0x2   :  { %12 = vsyncpa [#allocation4], 0  ;;  %s1441_s18 = smov [#allocation5]  }
   0x3   :  { %s30_s19 = sshll.u32 %s1441_s18, 4  ;;  %s31_s19 = int_to_ptr.vmem [resolvable:$true] %s30_s19 }
   0x4   :  { %s1363_s20 = scalar_lea.vmem %s31_s19, 12288  ;;  %p1368_p1 = scmp.lt.s32.totalorder %s31_s19, %s31_s19 }
   0x5   :  { %p1364_p0 = scmp.ne.s32.totalorder %s31_s19, %s1363_s20  ;;  %p1369_p2 = scmp.lt.s32.totalorder %s1363_s20, %s1363_s20 }
   0x7   :  { %p1370_p3 = por %p1369_p2, %p1368_p1 }
   0x9   :  { %p1371_p4 = pnand %p1370_p3, %p1364_p0 }
   0xb   :  { %1374 = shalt.err (!%p1371_p4)
}
   0xc   :  { %s1442_s21 = smov 128   ;;  %s1443_s22 = smov 8  }
   0xd   :  { %36 = dma.hbm_to_vmem [thread:$0]  %s1506_s1, 12288, %s31_s19, [#allocation6], %s1442_s21, %s1442_s21, %s1443_s22  }
   0xe   :  { %s1444_s25 = smov [#allocation2]  }
   0xf   :  { %s18_s26 = sshll.u32 %s1444_s25, 4  ;;  %s19_s26 = int_to_ptr.vmem [resolvable:$true] %s18_s26 }
  0x10   :  { %s1383_s27 = scalar_lea.vmem %s19_s26, 768  ;;  %p1388_p6 = scmp.lt.s32.totalorder %s19_s26, %s19_s26 }
  0x11   :  { %p1384_p5 = scmp.ne.s32.totalorder %s19_s26, %s1383_s27  ;;  %p1389_p7 = scmp.lt.s32.totalorder %s1383_s27, %s1383_s27 }
  0x13   :  { %p1390_p8 = por %p1389_p7, %p1388_p6 }
  0x15   :  { %p1391_p9 = pnand %p1390_p8, %p1384_p5 }
  0x17   :  { %1394 = shalt.err (!%p1391_p9)
}
  0x18   :  { %s1445_s28 = smov 384   ;;  %s1446_s29 = smov 24  }
  0x19   :  { %24 = dma.hbm_to_vmem [thread:$0]  %s1505_s0, 768, %s19_s26, [#allocation3], %s1445_s28, %s1445_s28, %s1446_s29  }
  0x1a   :  { %s1447_s7 = smov [#allocation7]  }
  0x1b   :  { %s44_s8 = sshll.u32 %s1447_s7, 4  ;;  %s45_s8 = int_to_ptr.vmem [resolvable:$true] %s44_s8 }
  0x1c   :  { %s1403_s1 = scalar_lea.vmem %s45_s8, 2048  ;;  %p1408_p11 = scmp.lt.s32.totalorder %s45_s8, %s45_s8 }
  0x1d   :  { %p1404_p10 = scmp.ne.s32.totalorder %s45_s8, %s1403_s1  ;;  %p1409_p12 = scmp.lt.s32.totalorder %s1403_s1, %s1403_s1 }
  0x1f   :  { %p1410_p13 = por %p1409_p12, %p1408_p11 }
  0x21   :  { %p1411_p0 = pnand %p1410_p13, %p1404_p10 }
  0x23   :  { %1414 = shalt.err (!%p1411_p0)
}
  0x24   :  { %s1448_s9 = smov 64   ;;  %s1449_s10 = smov 4  }
  0x25   :  { %50 = dma.hbm_to_vmem [thread:$0]  %s1508_s3, 2048, %s45_s8, [#allocation6], %s1448_s9, %s1448_s9, %s1449_s10  }
  0x26   :  { %1435 = dma.done.wait [#allocation3], 768  }
  0x27   :  { %1436 = vsyncadd [#allocation3], 4294966528 }
  0x28   :  { %1437 = dma.done.wait [#allocation6], 14336  }
  0x29   :  { %1438 = vsyncadd [#allocation6], 4294952960  ;;  %v1186_v0 = vld [vmem:[#allocation5 + $0x74] ss:$8 sps:$4 sm:$0xff]   ;;  %v1188_v1 = vld [vmem:[#allocation5 + $0x70] ss:$8 sps:$4 sm:$0xff]  }
  0x2a   :  { %687 = vmatprep.subr.bf16.mxu0 %v1186_v0  ;;  %v1189_v2 = vld [vmem:[#allocation5 + $0x174] ss:$8 sps:$4 sm:$0xff]   ;;  %v1191_v3 = vld [vmem:[#allocation5 + $0x170] ss:$8 sps:$4 sm:$0xff]   ;;  %v1192_v4 = vld [vmem:[#allocation5 + $0x64] ss:$8 sps:$4 sm:$0xff]  }
  0x2b   :  { %688 = vmatpush1.bf16.msra.mxu0 %v1188_v1  ;;  %v1194_v5 = vld [vmem:[#allocation5 + $0x60] ss:$8 sps:$4 sm:$0xff]   ;;  %730 = vmatprep.subr.bf16.mxu1 %v1189_v2  ;;  %v1195_v6 = vld [vmem:[#allocation5 + $0x164] ss:$8 sps:$4 sm:$0xff]   ;;  %v1198_v8 = vld [vmem:[#allocation5 + $0x54] ss:$8 sps:$4 sm:$0xff]  }
  0x2c   :  { %731 = vmatpush1.bf16.msra.mxu1 %v1191_v3  ;;  %689 = vmatprep.subr.bf16.mxu0 %v1192_v4  ;;  %v1197_v7 = vld [vmem:[#allocation5 + $0x160] ss:$8 sps:$4 sm:$0xff]   ;;  %v1200_v9 = vld [vmem:[#allocation5 + $0x50] ss:$8 sps:$4 sm:$0xff]   ;;  %v1201_v10 = vld [vmem:[#allocation5 + $0x154] ss:$8 sps:$4 sm:$0xff]  }
  0x2d   :  { %732 = vmatprep.subr.bf16.mxu1 %v1195_v6  ;;  %v1204_v11 = vld [vmem:[#allocation5 + $0x44] ss:$8 sps:$4 sm:$0xff]   ;;  %v1203_v12 = vld [vmem:[#allocation5 + $0x150] ss:$8 sps:$4 sm:$0xff]   ;;  %v1206_v14 = vld [vmem:[#allocation5 + $0x40] ss:$8 sps:$4 sm:$0xff]  }
  0x2e   :  { %v1207_v13 = vld [vmem:[#allocation5 + $0x144] ss:$8 sps:$4 sm:$0xff]   ;;  %v1210_v15 = vld [vmem:[#allocation5 + $0x34] ss:$8 sps:$4 sm:$0xff]   ;;  %v1209_v16 = vld [vmem:[#allocation5 + $0x140] ss:$8 sps:$4 sm:$0xff]  }
  0x2f   :  { %690 = vmatpush1.bf16.msra.mxu0 %v1194_v5  ;;  %v1213_v17 = vld [vmem:[#allocation5 + $0x134] ss:$8 sps:$4 sm:$0xff]   ;;  %v1212_v18 = vld [vmem:[#allocation5 + $0x30] ss:$8 sps:$4 sm:$0xff]   ;;  %v1216_v19 = vld [vmem:[#allocation5 + $0x24] ss:$8 sps:$4 sm:$0xff]  }
  0x30   :  { %691 = vmatprep.subr.bf16.mxu0 %v1198_v8  ;;  %733 = vmatpush1.bf16.msra.mxu1 %v1197_v7  ;;  %v1215_v20 = vld [vmem:[#allocation5 + $0x130] ss:$8 sps:$4 sm:$0xff]   ;;  %v1219_v21 = vld [vmem:[#allocation5 + $0x124] ss:$8 sps:$4 sm:$0xff]   ;;  %v1218_v22 = vld [vmem:[#allocation5 + $0x20] ss:$8 sps:$4 sm:$0xff]  }
  0x31   :  { %734 = vmatprep.subr.bf16.mxu1 %v1201_v10  ;;  %v1222_v23 = vld [vmem:[#allocation5 + $0x14] ss:$8 sps:$4 sm:$0xff]   ;;  %v1221_v24 = vld [vmem:[#allocation5 + $0x120] ss:$8 sps:$4 sm:$0xff]   ;;  %v1224_v26 = vld [vmem:[#allocation5 + $0x10] ss:$8 sps:$4 sm:$0xff]  }
  0x32   :  { %v1225_v25 = vld [vmem:[#allocation5 + $0x114] ss:$8 sps:$4 sm:$0xff]   ;;  %v1228_v27 = vld [vmem:[#allocation5 + $0x4] ss:$8 sps:$4 sm:$0xff]   ;;  %v1227_v28 = vld [vmem:[#allocation5 + $0x110] ss:$8 sps:$4 sm:$0xff]  }
  0x33   :  { %692 = vmatpush1.bf16.msra.mxu0 %v1200_v9  ;;  %v1231_v29 = vld [vmem:[#allocation5 + $0x104] ss:$8 sps:$4 sm:$0xff]   ;;  %v1230_v30 = vld [vmem:[#allocation5] ss:$8 sps:$4 sm:$0xff]   ;;  %v1234_v31 = vld [vmem:[#allocation5 + $0xf4] ss:$8 sps:$4 sm:$0xff]  }
  0x34   :  { %693 = vmatprep.subr.bf16.mxu0 %v1204_v11  ;;  %735 = vmatpush1.bf16.msra.mxu1 %v1203_v12  ;;  %v1233_v32 = vld [vmem:[#allocation5 + $0x100] ss:$8 sps:$4 sm:$0xff]   ;;  %v1237_v33 = vld [vmem:[#allocation5 + $0x1f4] ss:$8 sps:$4 sm:$0xff]   ;;  %v1236_v34 = vld [vmem:[#allocation5 + $0xf0] ss:$8 sps:$4 sm:$0xff]  }
  0x35   :  { %736 = vmatprep.subr.bf16.mxu1 %v1207_v13  ;;  %v1240_v35 = vld [vmem:[#allocation5 + $0xe4] ss:$8 sps:$4 sm:$0xff]   ;;  %v1239_v36 = vld [vmem:[#allocation5 + $0x1f0] ss:$8 sps:$4 sm:$0xff]   ;;  %v1242_v38 = vld [vmem:[#allocation5 + $0xe0] ss:$8 sps:$4 sm:$0xff]  }
  0x36   :  { %v1243_v37 = vld [vmem:[#allocation5 + $0x1e4] ss:$8 sps:$4 sm:$0xff]   ;;  %v1246_v39 = vld [vmem:[#allocation5 + $0xd4] ss:$8 sps:$4 sm:$0xff]   ;;  %v1245_v40 = vld [vmem:[#allocation5 + $0x1e0] ss:$8 sps:$4 sm:$0xff]  }
  0x37   :  { %694 = vmatpush1.bf16.msra.mxu0 %v1206_v14  ;;  %v1249_v41 = vld [vmem:[#allocation5 + $0x1d4] ss:$8 sps:$4 sm:$0xff]   ;;  %v1248_v42 = vld [vmem:[#allocation5 + $0xd0] ss:$8 sps:$4 sm:$0xff]   ;;  %v1252_v43 = vld [vmem:[#allocation5 + $0xc4] ss:$8 sps:$4 sm:$0xff]  }
  0x38   :  { %695 = vmatprep.subr.bf16.mxu0 %v1210_v15  ;;  %737 = vmatpush1.bf16.msra.mxu1 %v1209_v16  ;;  %v1251_v44 = vld [vmem:[#allocation5 + $0x1d0] ss:$8 sps:$4 sm:$0xff]   ;;  %v1255_v45 = vld [vmem:[#allocation5 + $0x1c4] ss:$8 sps:$4 sm:$0xff]   ;;  %v1254_v46 = vld [vmem:[#allocation5 + $0xc0] ss:$8 sps:$4 sm:$0xff]  }
  0x39   :  { %738 = vmatprep.subr.bf16.mxu1 %v1213_v17  ;;  %v1283_v47 = vld [vmem:[#allocation2 + $0x4] ss:$24 sps:$4 sm:$0xff]   ;;  %v1257_v49 = vld [vmem:[#allocation5 + $0x1c0] ss:$8 sps:$4 sm:$0xff]   ;;  %v1260_v52 = vld [vmem:[#allocation5 + $0xb0] ss:$8 sps:$4 sm:$0xff]  }
  0x3a   :  { %v1258_v48 = vld [vmem:[#allocation5 + $0xb4] ss:$8 sps:$4 sm:$0xff]   ;;  %719 = vmatprep.mubr.bf16.mxu0 %v1283_v47  ;;  %v1264_v53 = vld [vmem:[#allocation5 + $0xa4] ss:$8 sps:$4 sm:$0xff]   ;;  %v1263_v54 = vld [vmem:[#allocation5 + $0x1b0] ss:$8 sps:$4 sm:$0xff]  }
  0x3b   :  { %696 = vmatpush1.bf16.msra.mxu0 %v1212_v18  ;;  %v1261_v50 = vld [vmem:[#allocation5 + $0x1b4] ss:$8 sps:$4 sm:$0xff]   ;;  %v1267_v55 = vld [vmem:[#allocation5 + $0x1a4] ss:$8 sps:$4 sm:$0xff]   ;;  %v1266_v56 = vld [vmem:[#allocation5 + $0xa0] ss:$8 sps:$4 sm:$0xff]  }
  0x3c   :  { %697 = vmatprep.subr.bf16.mxu0 %v1216_v19  ;;  %739 = vmatpush1.bf16.msra.mxu1 %v1215_v20  ;;  %v1290_v51 = vld [vmem:[#allocation2 + $0xc] ss:$24 sps:$4 sm:$0xff]   ;;  %v1269_v58 = vld [vmem:[#allocation5 + $0x1a0] ss:$8 sps:$4 sm:$0xff]   ;;  %v1272_v60 = vld [vmem:[#allocation5 + $0x90] ss:$8 sps:$4 sm:$0xff]  }
  0x3d   :  { %740 = vmatprep.subr.bf16.mxu1 %v1219_v21  ;;  %762 = vmatprep.mubr.bf16.mxu1 %v1290_v51  ;;  %v1270_v57 = vld [vmem:[#allocation5 + $0x94] ss:$8 sps:$4 sm:$0xff]   ;;  %v1276_v61 = vld [vmem:[#allocation5 + $0x84] ss:$8 sps:$4 sm:$0xff]   ;;  %v1275_v62 = vld [vmem:[#allocation5 + $0x190] ss:$8 sps:$4 sm:$0xff]  }
  0x3e   :  { %v1273_v59 = vld [vmem:[#allocation5 + $0x194] ss:$8 sps:$4 sm:$0xff]   ;;  %v1279_v63 = vld [vmem:[#allocation5 + $0x184] ss:$8 sps:$4 sm:$0xff]   ;;  %v1278_v0 = vld [vmem:[#allocation5 + $0x80] ss:$8 sps:$4 sm:$0xff]  }
  0x3f   :  { %698 = vmatpush1.bf16.msra.mxu0 %v1218_v22  ;;  %v1287_v1 = vld [vmem:[#allocation5 + $0x274] ss:$8 sps:$4 sm:$0xff]   ;;  %v1284_v2 = vld [vmem:[#allocation5 + $0x180] ss:$8 sps:$4 sm:$0xff]   ;;  %v1285_v4 = vld [vmem:[#allocation5 + $0x270] ss:$8 sps:$4 sm:$0xff]  }
  0x40   :  { %699 = vmatprep.subr.bf16.mxu0 %v1222_v23  ;;  %741 = vmatpush1.bf16.msra.mxu1 %v1221_v24  ;;  %v1281_v3 = vld [vmem:[#allocation2] ss:$24 sps:$4 sm:$0xff]   ;;  %v1293_v6 = vld [vmem:[#allocation5 + $0x264] ss:$8 sps:$4 sm:$0xff]   ;;  %v1296_v9 = vld [vmem:[#allocation5 + $0x254] ss:$8 sps:$4 sm:$0xff]  }
  0x41   :  { %742 = vmatprep.subr.bf16.mxu1 %v1225_v25  ;;  %v1288_v5 = vld [vmem:[#allocation2 + $0x8] ss:$24 sps:$4 sm:$0xff]   ;;  %v1291_v7 = vld [vmem:[#allocation5 + $0x260] ss:$8 sps:$4 sm:$0xff]   ;;  %v1338_v8 = vld [vmem:[#allocation2 + $0x14] ss:$24 sps:$4 sm:$0xff]  }
  0x42   :  { %v1294_v10 = vld [vmem:[#allocation5 + $0x250] ss:$8 sps:$4 sm:$0xff]   ;;  %v1299_v11 = vld [vmem:[#allocation5 + $0x244] ss:$8 sps:$4 sm:$0xff]   ;;  %v1297_v12 = vld [vmem:[#allocation5 + $0x240] ss:$8 sps:$4 sm:$0xff]  }
  0x43   :  { %700 = vmatpush1.bf16.msra.mxu0 %v1224_v26  ;;  %v1302_v13 = vld [vmem:[#allocation5 + $0x234] ss:$8 sps:$4 sm:$0xff]   ;;  %v1300_v14 = vld [vmem:[#allocation5 + $0x230] ss:$8 sps:$4 sm:$0xff]   ;;  %v1305_v15 = vld [vmem:[#allocation5 + $0x224] ss:$8 sps:$4 sm:$0xff]  }
  0x44   :  { %701 = vmatprep.subr.bf16.mxu0 %v1228_v27  ;;  %743 = vmatpush1.bf16.msra.mxu1 %v1227_v28  ;;  %v1303_v16 = vld [vmem:[#allocation5 + $0x220] ss:$8 sps:$4 sm:$0xff]   ;;  %v1308_v17 = vld [vmem:[#allocation5 + $0x214] ss:$8 sps:$4 sm:$0xff]   ;;  %v1306_v18 = vld [vmem:[#allocation5 + $0x210] ss:$8 sps:$4 sm:$0xff]  }
  0x45   :  { %744 = vmatprep.subr.bf16.mxu1 %v1231_v29  ;;  %v1311_v19 = vld [vmem:[#allocation5 + $0x204] ss:$8 sps:$4 sm:$0xff]   ;;  %v1309_v20 = vld [vmem:[#allocation5 + $0x200] ss:$8 sps:$4 sm:$0xff]   ;;  %v1314_v21 = vld [vmem:[#allocation5 + $0x2f4] ss:$8 sps:$4 sm:$0xff]  }
  0x46   :  { %v1312_v22 = vld [vmem:[#allocation5 + $0x2f0] ss:$8 sps:$4 sm:$0xff]   ;;  %v1317_v23 = vld [vmem:[#allocation5 + $0x2e4] ss:$8 sps:$4 sm:$0xff]   ;;  %v1315_v24 = vld [vmem:[#allocation5 + $0x2e0] ss:$8 sps:$4 sm:$0xff]  }
  0x47   :  { %702 = vmatpush1.bf16.msra.mxu0 %v1230_v30  ;;  %v1320_v25 = vld [vmem:[#allocation5 + $0x2d4] ss:$8 sps:$4 sm:$0xff]   ;;  %v1318_v26 = vld [vmem:[#allocation5 + $0x2d0] ss:$8 sps:$4 sm:$0xff]   ;;  %v1323_v27 = vld [vmem:[#allocation5 + $0x2c4] ss:$8 sps:$4 sm:$0xff]  }
  0x48   :  { %703 = vmatprep.subr.bf16.mxu0 %v1234_v31  ;;  %745 = vmatpush1.bf16.msra.mxu1 %v1233_v32  ;;  %v1321_v28 = vld [vmem:[#allocation5 + $0x2c0] ss:$8 sps:$4 sm:$0xff]   ;;  %v1326_v29 = vld [vmem:[#allocation5 + $0x2b4] ss:$8 sps:$4 sm:$0xff]   ;;  %v1324_v30 = vld [vmem:[#allocation5 + $0x2b0] ss:$8 sps:$4 sm:$0xff]  }
  0x49   :  { %746 = vmatprep.subr.bf16.mxu1 %v1237_v33  ;;  %v1329_v31 = vld [vmem:[#allocation5 + $0x2a4] ss:$8 sps:$4 sm:$0xff]   ;;  %v1327_v32 = vld [vmem:[#allocation5 + $0x2a0] ss:$8 sps:$4 sm:$0xff]   ;;  %v1332_v33 = vld [vmem:[#allocation5 + $0x294] ss:$8 sps:$4 sm:$0xff]  }
  0x4a   :  { %v1348_v47 = vld [vmem:[#allocation7 + $0x18] sm:$0xff]   ;;  %v1352_v51 = vld [vmem:[#allocation7 + $0x8] sm:$0xff]   ;;  %s1450_s14 = smov [#allocation8]  }
  0x4b   :  { %704 = vmatpush2.bf16.msra.mxu0 %v1236_v34  ;;  %v1330_v34 = vld [vmem:[#allocation5 + $0x290] ss:$8 sps:$4 sm:$0xff]   ;;  %s1013_s15 = sshll.u32 %s1450_s14, 4  ;;  %s1014_s15 = int_to_ptr.vmem [resolvable:$true] %s1013_s15 }
  0x4c   :  { %705 = vmatprep.subr.bf16.mxu0 %v1240_v35  ;;  %747 = vmatpush2.bf16.msra.mxu1 %v1239_v36  ;;  %v1335_v35 = vld [vmem:[#allocation5 + $0x284] ss:$8 sps:$4 sm:$0xff]   ;;  %v1333_v36 = vld [vmem:[#allocation5 + $0x280] ss:$8 sps:$4 sm:$0xff]   ;;  %s1415_s16 = scalar_lea.vmem %s1014_s15, 128  ;;  %p1420_p2 = scmp.lt.s32.totalorder %s1014_s15, %s1014_s15 }
  0x4d   :  { %748 = vmatprep.subr.bf16.mxu1 %v1243_v37  ;;  %v1336_v37 = vld [vmem:[#allocation2 + $0x10] ss:$24 sps:$4 sm:$0xff]   ;;  %p1416_p1 = scmp.ne.s32.totalorder %s1014_s15, %s1415_s16  ;;  %p1421_p3 = scmp.lt.s32.totalorder %s1415_s16, %s1415_s16 }
  0x4f   :  { %706 = vmatpush2.bf16.msra.mxu0 %v1242_v38  ;;  %v1339_v38 = vld [vmem:[#allocation7 + $0x78] sm:$0xff]   ;;  %p1422_p4 = por %p1421_p3, %p1420_p2 }
  0x50   :  { %707 = vmatprep.subr.bf16.mxu0 %v1246_v39  ;;  %749 = vmatpush2.bf16.msra.mxu1 %v1245_v40  ;;  %v1340_v39 = vld [vmem:[#allocation7 + $0x38] sm:$0xff]   ;;  %v1341_v40 = vld [vmem:[#allocation7 + $0x70] sm:$0xff]  }
  0x51   :  { %750 = vmatprep.subr.bf16.mxu1 %v1249_v41  ;;  %v1342_v41 = vld [vmem:[#allocation7 + $0x30] sm:$0xff]   ;;  %p1423_p5 = pnand %p1422_p4, %p1416_p1 }
  0x53   :  { %708 = vmatpush2.bf16.msra.mxu0 %v1248_v42  ;;  %v1343_v42 = vld [vmem:[#allocation7 + $0x68] sm:$0xff]  }
  0x54   :  { %709 = vmatprep.subr.bf16.mxu0 %v1252_v43  ;;  %751 = vmatpush2.bf16.msra.mxu1 %v1251_v44  ;;  %v1344_v43 = vld [vmem:[#allocation7 + $0x28] sm:$0xff]   ;;  %v1345_v44 = vld [vmem:[#allocation7 + $0x60] sm:$0xff]  }
  0x55   :  { %752 = vmatprep.subr.bf16.mxu1 %v1255_v45  ;;  %v1346_v45 = vld [vmem:[#allocation7 + $0x20] sm:$0xff]  }
  0x57   :  { %710 = vmatpush2.bf16.msra.mxu0 %v1254_v46  ;;  %v1347_v46 = vld [vmem:[#allocation7 + $0x58] sm:$0xff]  }
  0x58   :  { %711 = vmatprep.subr.bf16.mxu0 %v1258_v48  ;;  %753 = vmatpush2.bf16.msra.mxu1 %v1257_v49  ;;  %v1349_v48 = vld [vmem:[#allocation7 + $0x50] sm:$0xff]  }
  0x59   :  { %754 = vmatprep.subr.bf16.mxu1 %v1261_v50  ;;  %v1350_v49 = vld [vmem:[#allocation7 + $0x10] sm:$0xff]   ;;  %v1351_v50 = vld [vmem:[#allocation7 + $0x48] sm:$0xff]  }
  0x5b   :  { %712 = vmatpush2.bf16.msra.mxu0 %v1260_v52  ;;  %v1353_v52 = vld [vmem:[#allocation7 + $0x40] sm:$0xff]  }
  0x5c   :  { %713 = vmatprep.subr.bf16.mxu0 %v1264_v53  ;;  %755 = vmatpush2.bf16.msra.mxu1 %v1263_v54  ;;  %v1354_v53 = vld [vmem:[#allocation7] sm:$0xff]   ;;  %v167_v54 = vlaneseq }
  0x5d   :  { %756 = vmatprep.subr.bf16.mxu1 %v1267_v55 }
  0x5f   :  { %714 = vmatpush2.bf16.msra.mxu0 %v1266_v56  ;;  %v168_v56 = vshrl.u32 %v167_v54, 7 }
  0x60   :  { %715 = vmatprep.subr.bf16.mxu0 %v1270_v57  ;;  %757 = vmatpush2.bf16.msra.mxu1 %v1269_v58 }
  0x61   :  { %758 = vmatprep.subr.bf16.mxu1 %v1273_v59  ;;  %v173_v59 = vsub.s32 1, %v168_v56 }
  0x63   :  { %716 = vmatpush2.bf16.msra.mxu0 %v1272_v60  ;;  %v165_v60 = vld [vmem:[%s1507_s2] sm:$0x3] }
  0x64   :  { %717 = vmatprep.subr.bf16.mxu0 %v1276_v61  ;;  %759 = vmatpush2.bf16.msra.mxu1 %v1275_v62  ;;  %v169_v61 = vsub.s32 0, %v168_v56 }
  0x65   :  { %760 = vmatprep.subr.bf16.mxu1 %v1279_v63 }
  0x67   :  { %718 = vmatpush2.bf16.msra.mxu0 %v1278_v0  ;;  %v174_v0 = vrot.slane %v165_v60, %v173_v59 }
  0x68   :  { %773 = vmatprep.subr.bf16.mxu0 %v1287_v1  ;;  %761 = vmatpush2.bf16.msra.mxu1 %v1284_v2  ;;  %v170_v1 = vrot.slane %v165_v60, %v169_v61 }
  0x69   :  { %1154 = vmatprep.subr.bf16.mxu1 %v1339_v38 }
  0x6a   :  { %720 = vmatmul.mubr.bf16.vlgmr.msra.gmra.mxu0 %v1281_v3 }
  0x6b   :  { %774 = vmatpush1.bf16.msra.mxu0 %v1285_v4  ;;  %763 = vmatmul.mubr.bf16.vlgmr.msra.gmra.mxu1 %v1288_v5 }
  0x6c   :  { %775 = vmatprep.subr.bf16.mxu0 %v1293_v6  ;;  %805 = vmatprep.mubr.bf16.mxu0 %v1338_v8 }
  0x6d   :  { %1155 = vmatpush3.bf16.msra.mxu1 %v1340_v39 }
  0x6e   :  { %1156 = vmatprep.subr.bf16.mxu1 %v1341_v40 }
  0x6f   :  { %776 = vmatpush1.bf16.msra.mxu0 %v1291_v7 }
  0x70   :  { %777 = vmatprep.subr.bf16.mxu0 %v1296_v9 }
  0x71   :  { %1157 = vmatpush3.bf16.msra.mxu1 %v1342_v41 }
  0x72   :  { %1158 = vmatprep.subr.bf16.mxu1 %v1343_v42 }
  0x73   :  { %778 = vmatpush1.bf16.msra.mxu0 %v1294_v10 }
  0x74   :  { %779 = vmatprep.subr.bf16.mxu0 %v1299_v11 }
  0x75   :  { %1159 = vmatpush3.bf16.msra.mxu1 %v1344_v43 }
  0x76   :  { %1160 = vmatprep.subr.bf16.mxu1 %v1345_v44 }
  0x77   :  { %780 = vmatpush1.bf16.msra.mxu0 %v1297_v12 }
  0x78   :  { %781 = vmatprep.subr.bf16.mxu0 %v1302_v13 }
  0x79   :  { %1161 = vmatpush3.bf16.msra.mxu1 %v1346_v45 }
  0x7a   :  { %1162 = vmatprep.subr.bf16.mxu1 %v1347_v46 }
  0x7b   :  { %782 = vmatpush1.bf16.msra.mxu0 %v1300_v14 }
  0x7c   :  { %783 = vmatprep.subr.bf16.mxu0 %v1305_v15 }
  0x7d   :  { %1163 = vmatpush3.bf16.msra.mxu1 %v1348_v47 }
  0x7e   :  { %1164 = vmatprep.subr.bf16.mxu1 %v1349_v48 }
  0x7f   :  { %784 = vmatpush1.bf16.msra.mxu0 %v1303_v16 }
  0x80   :  { %785 = vmatprep.subr.bf16.mxu0 %v1308_v17 }
  0x81   :  { %1165 = vmatpush3.bf16.msra.mxu1 %v1350_v49 }
  0x82   :  { %1166 = vmatprep.subr.bf16.mxu1 %v1351_v50 }
  0x83   :  { %786 = vmatpush1.bf16.msra.mxu0 %v1306_v18 }
  0x84   :  { %787 = vmatprep.subr.bf16.mxu0 %v1311_v19 }
  0x85   :  { %1167 = vmatpush3.bf16.msra.mxu1 %v1352_v51 }
  0x86   :  { %1168 = vmatprep.subr.bf16.mxu1 %v1353_v52 }
  0x87   :  { %788 = vmatpush1.bf16.msra.mxu0 %v1309_v20 }
  0x88   :  { %789 = vmatprep.subr.bf16.mxu0 %v1314_v21 }
  0x89   :  { %1169 = vmatpush3.bf16.msra.mxu1 %v1354_v53 }
  0x8b   :  { %790 = vmatpush2.bf16.msra.mxu0 %v1312_v22 }
  0x8c   :  { %791 = vmatprep.subr.bf16.mxu0 %v1317_v23 }
  0x8f   :  { %792 = vmatpush2.bf16.msra.mxu0 %v1315_v24 }
  0x90   :  { %793 = vmatprep.subr.bf16.mxu0 %v1320_v25 }
  0x93   :  { %794 = vmatpush2.bf16.msra.mxu0 %v1318_v26 }
  0x94   :  { %795 = vmatprep.subr.bf16.mxu0 %v1323_v27 }
  0x97   :  { %796 = vmatpush2.bf16.msra.mxu0 %v1321_v28 }
  0x98   :  { %797 = vmatprep.subr.bf16.mxu0 %v1326_v29 }
  0x9b   :  { %798 = vmatpush2.bf16.msra.mxu0 %v1324_v30 }
  0x9c   :  { %799 = vmatprep.subr.bf16.mxu0 %v1329_v31  ;;  %v1128_v31 = vld [vmem:[%s1509_s4] ss:$0 sm:$0xff] }
  0x9f   :  { %800 = vmatpush2.bf16.msra.mxu0 %v1327_v32 }
  0xa0   :  { %801 = vmatprep.subr.bf16.mxu0 %v1332_v33 }
  0xa3   :  { %802 = vmatpush2.bf16.msra.mxu0 %v1330_v34 }
  0xa4   :  { %803 = vmatprep.subr.bf16.mxu0 %v1335_v35 }
  0xa7   :  { %804 = vmatpush2.bf16.msra.mxu0 %v1333_v36 }
  0xaa   :  { %806 = vmatmul.mubr.bf16.vlgmr.msra.gmra.mxu0 %v1336_v37 }
 0x12a   :  { %v721_v55 = vpop.f32.mrf.mxu0 }
 0x12b   :  { %v764_v58 = vpop.f32.mrf.mxu1  ;;  %v722_v6 = vadd.f32 %v721_v55, %v170_v1 }
 0x12c   :  { %v723_v57 = vpop.f32.mrf.mxu0 }
 0x12d   :  { %v766_v63 = vpop.f32.mrf.mxu1  ;;  %v724_v4 = vadd.f32 %v723_v57, %v174_v0  ;;  %v765_v13 = vadd.f32 %v764_v58, %v722_v6 }
 0x12e   :  { %v725_v62 = vpop.f32.mrf.mxu0 }
 0x12f   :  { %v768_v3 = vpop.f32.mrf.mxu1  ;;  %v726_v5 = vadd.f32 %v725_v62, %v170_v1  ;;  %v767_v11 = vadd.f32 %v766_v63, %v724_v4 }
 0x130   :  { %v727_v2 = vpop.f32.mrf.mxu0 }
 0x131   :  { %v728_v8 = vadd.f32 %v727_v2, %v174_v0  ;;  %v770_v9 = vpop.f32.mrf.mxu1  ;;  %v769_v12 = vadd.f32 %v768_v3, %v726_v5 }
 0x133   :  { %v771_v15 = vadd.f32 %v770_v9, %v728_v8 }
 0x16a   :  { %v807_v7 = vpop.f32.mrf.mxu0 }
 0x16b   :  { %v808_v18 = vadd.f32 %v807_v7, %v765_v13 }
 0x16c   :  { %v809_v10 = vpop.f32.mrf.mxu0 }
 0x16d   :  { %v810_v16 = vadd.f32 %v809_v10, %v767_v11  ;;  %v816_v24 = vmax.f32 %v808_v18, 0.0 }
 0x16e   :  { %v811_v14 = vpop.f32.mrf.mxu0 }
 0x16f   :  { %v812_v17 = vadd.f32 %v811_v14, %v769_v12  ;;  %v817_v22 = vmax.f32 %v810_v16, 0.0 }
 0x170   :  { %v813_v19 = vpop.f32.mrf.mxu0 }
 0x171   :  { %v814_v20 = vadd.f32 %v813_v19, %v771_v15  ;;  %v818_v21 = vmax.f32 %v812_v17, 0.0 }
 0x173   :  { %v819_v23 = vmax.f32 %v814_v20, 0.0  ;;  %v820_v26 = vpack.c.bf16 %v818_v21, %v816_v24 }
 0x175   :  { %v821_v25 = vpack.c.bf16 %v819_v23, %v817_v22 }
 0x177   :  { %989 = vmatprep.mubr.bf16.mxu1 %v821_v25 }
 0x178   :  { %990 = vmatmul.mubr.bf16.vlgmr.msra.gmra.mxu1 %v820_v26 }
 0x238   :  { %v1170_v27 = vpop.f32.mrf.mxu1 }
 0x23a   :  { %v1171_v28 = vpop.f32.mrf.mxu1 }
 0x23b   :  { %v1172_v30 = vadd.f32 %v1171_v28, %v1170_v27 }
 0x23c   :  { %v1173_v29 = vpop.f32.mrf.mxu1 }
 0x23d   :  { %v992_v34 = vadd.f32 %v1172_v30, %v1128_v31 }
 0x23e   :  { %v1174_v32 = vpop.f32.mrf.mxu1 }
 0x23f   :  { %v1175_v33 = vadd.f32 %v1174_v32, %v1173_v29 }
 0x241   :  { %v995_v35 = vadd.f32 %v1175_v33, %v1128_v31 }
 0x243   :  { %v1152_v36 = vpack.c.bf16 %v995_v35, %v992_v34 }
 0x245   :  { %1153 = vst [vmem:[#allocation8] sm:$0xff] %v1152_v36  }
 0x246   :  { %1426 = shalt.err (!%p1423_p5)
}
 0x247   :  { %1019 = dma.vmem_to_hbm [thread:$0]  %s1014_s15, 128, %s1510_s5, [#allocation4], %s1448_s9, %s1448_s9, %s1449_s10  }
 0x248   :  { %1439 = dma.done.wait [#allocation4], 128  }
 0x249   :  { %1440 = vsyncadd [#allocation4], 4294967168 }
 0x24a   :  { %1023 = vsyncpa [#allocation3], 1 }
 0x24b   :  { %1024 = vsyncpa [#allocation6], 1 }
 0x24c   :  { %1025 = vsyncpa [#allocation4], 1 }

</bundles_post_ra>
